<compile_context>
chip_gen: v6e
topology: v6e:2x2x1
jax: 0.10.0
libtpu: 0.0.40
codegen_flags: <defaults>
</compile_context>

<pallas_src>
import functools

import jax
import jax.numpy as jnp
from jax.experimental import pallas as pl
from jax.experimental.pallas import tpu as pltpu


def _dwconv3x3_kernel(x_ref, w_ref, b_ref, o_ref, *, H, W, C):
    # x_ref: (1, H, W*C)  activations, lane index = w*C + c
    # w_ref: (9, W*C)     tap-major depthwise weights tiled along W (f32), with the
    #                     W-edge-invalid lanes pre-zeroed (kx=0 @ w=0, kx=2 @ w=W-1)
    # b_ref: (1, W*C)     bias tiled along W (f32)
    # o_ref: (1, H, W*C)
    WC = W * C
    f32 = jnp.float32

    x = x_ref[0].astype(f32)                      # (H, WC)
    w = w_ref[...]                                # (9, WC) f32
    b = b_ref[...]                                # (1, WC) f32

    # Hoisted kx lane shifts: input columns w-1 / w / w+1, all lane-aligned after
    # the roll.  Wrapped edge lanes get multiplied by zeroed weight lanes below.
    x_l = pltpu.roll(x, shift=C, axis=1)          # input column w-1 at lane w*C + c
    x_r = pltpu.roll(x, shift=WC - C, axis=1)     # input column w+1 (== roll by -C)

    def row_mac(ky, extra=None):
        acc = x_l * w[3 * ky + 0:3 * ky + 1, :]
        acc = acc + x * w[3 * ky + 1:3 * ky + 2, :]
        acc = acc + x_r * w[3 * ky + 2:3 * ky + 3, :]
        if extra is not None:
            acc = acc + extra
        return acc

    rc_top = row_mac(0)        # ky=0: input row r contributes to output row r+1
    rc_mid = row_mac(1, b)     # ky=1: same row; bias fused here
    rc_bot = row_mac(2)        # ky=2: input row r contributes to output row r-1

    # H halo: sublane rolls (+1 / -1 row) with a row-index select for zero padding.
    row = jax.lax.broadcasted_iota(jnp.int32, (H, WC), 0)
    top = jnp.where(row >= 1, pltpu.roll(rc_top, shift=1, axis=0), 0.0)
    bot = jnp.where(row < H - 1, pltpu.roll(rc_bot, shift=H - 1, axis=0), 0.0)

    o_ref[0] = (top + rc_mid + bot).astype(o_ref.dtype)


def dwconv_pvt(x, weight, bias, H, W):
    """x: (B, N, C) with N == H*W; weight: (C, 1, 3, 3); bias: (C,). Returns (B, N, C)."""
    B, N, C = x.shape
    assert N == H * W
    WC = W * C

    # Free row-major view: (B, H*W, C) == (B, H, W*C).  No pad, no transpose.
    x_flat = x.reshape(B, H, WC)

    # Weights: (C,1,3,3) -> (3,3,C) -> tiled across W -> (9, W*C) f32.  Lanes that
    # would read the left/right zero-padding column are zeroed here, so the kernel
    # needs no lane masks for the W halo.  One-time O(9*W*C) wrapper work.
    w_hwc = jnp.transpose(weight[:, 0, :, :], (1, 2, 0)).astype(jnp.float32)   # (3,3,C)
    w_tiled = jnp.tile(w_hwc[:, :, None, :], (1, 1, W, 1))                     # (3,3,W,C)
    w_tiled = w_tiled.at[:, 0, 0, :].set(0.0)       # kx=0 tap reads column -1 at w=0
    w_tiled = w_tiled.at[:, 2, W - 1, :].set(0.0)   # kx=2 tap reads column W  at w=W-1
    w_flat = w_tiled.reshape(9, WC)
    b_flat = jnp.tile(bias.astype(jnp.float32), (W,)).reshape(1, WC)

    kernel = functools.partial(_dwconv3x3_kernel, H=H, W=W, C=C)

    # Mem-bound custom call: ~18 flops/element, tensor once in + once out.
    itemsize = jnp.dtype(x.dtype).itemsize
    cost = pl.CostEstimate(
        flops=18 * B * H * W * C,
        transcendentals=0,
        bytes_accessed=2 * B * H * W * C * itemsize + 10 * WC * 4,
    )
    # Explicit scoped-VMEM budget: double-buffered in/out blocks + params + f32
    # temporaries (x, 2 lane-shifted copies, 3 row MACs, ...) with headroom.
    block_bytes = H * WC * itemsize
    vmem_limit = 4 * block_bytes + 10 * H * WC * 4 + 10 * WC * 4 + (4 << 20)
    vmem_limit = int(min(max(vmem_limit, 16 << 20), 64 << 20))

    out = pl.pallas_call(
        kernel,
        out_shape=jax.ShapeDtypeStruct((B, H, WC), x.dtype),
        grid_spec=pltpu.PrefetchScalarGridSpec(
            num_scalar_prefetch=0,
            grid=(B,),
            in_specs=[
                pl.BlockSpec((1, H, WC), lambda b: (b, 0, 0)),
                pl.BlockSpec((9, WC), lambda b: (0, 0)),
                pl.BlockSpec((1, WC), lambda b: (0, 0)),
            ],
            out_specs=pl.BlockSpec((1, H, WC), lambda b: (b, 0, 0)),
        ),
        compiler_params=pltpu.CompilerParams(
            dimension_semantics=("parallel",),
            vmem_limit_bytes=vmem_limit,
        ),
        cost_estimate=cost,
    )(x_flat, w_flat, b_flat)

    # Free view back to (B, N, C).
    return out.reshape(B, N, C)


def _reference(x, weight, bias, H, W):
    """Pure-JAX reference mirroring the PyTorch NCHW depthwise conv."""
    B, N, C = x.shape
    x_nchw = jnp.transpose(x, (0, 2, 1)).reshape(B, C, H, W)
    y = jax.lax.conv_general_dilated(
        x_nchw, weight,
        window_strides=(1, 1), padding=((1, 1), (1, 1)),
        dimension_numbers=("NCHW", "OIHW", "NCHW"),
        feature_group_count=C)
    y = y + bias[None, :, None, None]
    return jnp.transpose(y.reshape(B, C, H * W), (0, 2, 1))


if __name__ == "__main__":
    key = jax.random.PRNGKey(0)
    B, C, H, W = 2, 32, 16, 16
    N = H * W

    kx, kw, kb = jax.random.split(key, 3)
    x = jax.random.normal(kx, (B, N, C), dtype=jnp.float32)
    # Deterministic synthetic parameters (nn.Conv2d(dim, dim, 3, 1, 1, groups=dim)):
    weight = jax.random.normal(kw, (C, 1, 3, 3), dtype=jnp.float32) * 0.1
    bias = jax.random.normal(kb, (C,), dtype=jnp.float32) * 0.1

    out = dwconv_pvt(x, weight, bias, H, W)
    out = jax.block_until_ready(out)

    ref = jax.block_until_ready(_reference(x, weight, bias, H, W))
    assert out.shape == (B, N, C)
    assert jnp.allclose(out, ref, atol=1e-5, rtol=1e-5), "mismatch vs reference"

    print("KERNEL_OK")
</pallas_src>

<mosaic_0001>
module attributes {stable_mosaic.version = 11 : i64} {
  func.func @_dwconv3x3_kernel(%arg0: i32, %arg1: memref<1x16x512xf32, #tpu.memory_space<vmem>>, %arg2: memref<9x512xf32, #tpu.memory_space<vmem>>, %arg3: memref<1x512xf32, #tpu.memory_space<vmem>>, %arg4: memref<1x16x512xf32, #tpu.memory_space<vmem>>) attributes {dimension_semantics = [#tpu.dimension_semantics<parallel>], iteration_bounds = array<i64: 2>, scalar_prefetch = 0 : i64, scratch_operands = 0 : i64, tpu.core_type = #tpu.core_type<tc>, window_params = [{transform_indices = @transform_0, window_bounds = array<i64: 1, 16, 512>}, {pipeline_mode = #tpu.pipeline_mode<synchronous>, transform_indices = @transform_1, window_bounds = array<i64: 9, 512>}, {pipeline_mode = #tpu.pipeline_mode<synchronous>, transform_indices = @transform_2, window_bounds = array<i64: 1, 512>}, {transform_indices = @transform_3, window_bounds = array<i64: 1, 16, 512>}]} {
    %c0 = arith.constant 0 : index
    %c0_0 = arith.constant 0 : index
    %c0_1 = arith.constant 0 : index
    %0 = vector.load %arg1[%c0, %c0_0, %c0_1] : memref<1x16x512xf32, #tpu.memory_space<vmem>>, vector<1x16x512xf32>
    %1 = vector.shape_cast %0 : vector<1x16x512xf32> to vector<16x512xf32>
    %c0_2 = arith.constant 0 : index
    %c0_3 = arith.constant 0 : index
    %2 = vector.load %arg2[%c0_2, %c0_3] : memref<9x512xf32, #tpu.memory_space<vmem>>, vector<9x512xf32>
    %c0_4 = arith.constant 0 : index
    %c0_5 = arith.constant 0 : index
    %3 = vector.load %arg3[%c0_4, %c0_5] : memref<1x512xf32, #tpu.memory_space<vmem>>, vector<1x512xf32>
    %c32_i32 = arith.constant 32 : i32
    %4 = tpu.dynamic_rotate %1 by %c32_i32 dim 1 : vector<16x512xf32>, i32 -> vector<16x512xf32>
    %c480_i32 = arith.constant 480 : i32
    %5 = tpu.dynamic_rotate %1 by %c480_i32 dim 1 : vector<16x512xf32>, i32 -> vector<16x512xf32>
    %6 = vector.extract_strided_slice %2 {offsets = [0, 0], sizes = [1, 512], strides = [1, 1]} : vector<9x512xf32> to vector<1x512xf32>
    %7 = vector.broadcast %6 : vector<1x512xf32> to vector<16x512xf32>
    %8 = arith.mulf %4, %7 : vector<16x512xf32>
    %9 = vector.extract_strided_slice %2 {offsets = [1, 0], sizes = [1, 512], strides = [1, 1]} : vector<9x512xf32> to vector<1x512xf32>
    %10 = vector.broadcast %9 : vector<1x512xf32> to vector<16x512xf32>
    %11 = arith.mulf %1, %10 : vector<16x512xf32>
    %12 = arith.addf %8, %11 : vector<16x512xf32>
    %13 = vector.extract_strided_slice %2 {offsets = [2, 0], sizes = [1, 512], strides = [1, 1]} : vector<9x512xf32> to vector<1x512xf32>
    %14 = vector.broadcast %13 : vector<1x512xf32> to vector<16x512xf32>
    %15 = arith.mulf %5, %14 : vector<16x512xf32>
    %16 = arith.addf %12, %15 : vector<16x512xf32>
    %17 = vector.extract_strided_slice %2 {offsets = [3, 0], sizes = [1, 512], strides = [1, 1]} : vector<9x512xf32> to vector<1x512xf32>
    %18 = vector.broadcast %17 : vector<1x512xf32> to vector<16x512xf32>
    %19 = arith.mulf %4, %18 : vector<16x512xf32>
    %20 = vector.extract_strided_slice %2 {offsets = [4, 0], sizes = [1, 512], strides = [1, 1]} : vector<9x512xf32> to vector<1x512xf32>
    %21 = vector.broadcast %20 : vector<1x512xf32> to vector<16x512xf32>
    %22 = arith.mulf %1, %21 : vector<16x512xf32>
    %23 = arith.addf %19, %22 : vector<16x512xf32>
    %24 = vector.extract_strided_slice %2 {offsets = [5, 0], sizes = [1, 512], strides = [1, 1]} : vector<9x512xf32> to vector<1x512xf32>
    %25 = vector.broadcast %24 : vector<1x512xf32> to vector<16x512xf32>
    %26 = arith.mulf %5, %25 : vector<16x512xf32>
    %27 = arith.addf %23, %26 : vector<16x512xf32>
    %28 = vector.broadcast %3 : vector<1x512xf32> to vector<16x512xf32>
    %29 = arith.addf %27, %28 : vector<16x512xf32>
    %30 = vector.extract_strided_slice %2 {offsets = [6, 0], sizes = [1, 512], strides = [1, 1]} : vector<9x512xf32> to vector<1x512xf32>
    %31 = vector.broadcast %30 : vector<1x512xf32> to vector<16x512xf32>
    %32 = arith.mulf %4, %31 : vector<16x512xf32>
    %33 = vector.extract_strided_slice %2 {offsets = [7, 0], sizes = [1, 512], strides = [1, 1]} : vector<9x512xf32> to vector<1x512xf32>
    %34 = vector.broadcast %33 : vector<1x512xf32> to vector<16x512xf32>
    %35 = arith.mulf %1, %34 : vector<16x512xf32>
    %36 = arith.addf %32, %35 : vector<16x512xf32>
    %37 = vector.extract_strided_slice %2 {offsets = [8, 0], sizes = [1, 512], strides = [1, 1]} : vector<9x512xf32> to vector<1x512xf32>
    %38 = vector.broadcast %37 : vector<1x512xf32> to vector<16x512xf32>
    %39 = arith.mulf %5, %38 : vector<16x512xf32>
    %40 = arith.addf %36, %39 : vector<16x512xf32>
    %41 = tpu.iota {dimensions = array<i32: 0>} : vector<16x512xi32>
    %c1_i32 = arith.constant 1 : i32
    %42 = vector.broadcast %c1_i32 : i32 to vector<16x512xi32>
    %43 = arith.cmpi sge, %41, %42 : vector<16x512xi32>
    %c1_i32_6 = arith.constant 1 : i32
    %44 = tpu.dynamic_rotate %16 by %c1_i32_6 dim 0 : vector<16x512xf32>, i32 -> vector<16x512xf32>
    %cst = arith.constant 0.000000e+00 : f32
    %45 = vector.broadcast %cst : f32 to vector<16x512xf32>
    %46 = arith.select %43, %44, %45 : vector<16x512xi1>, vector<16x512xf32>
    %c15_i32 = arith.constant 15 : i32
    %47 = vector.broadcast %c15_i32 : i32 to vector<16x512xi32>
    %48 = arith.cmpi slt, %41, %47 : vector<16x512xi32>
    %c15_i32_7 = arith.constant 15 : i32
    %49 = tpu.dynamic_rotate %40 by %c15_i32_7 dim 0 : vector<16x512xf32>, i32 -> vector<16x512xf32>
    %cst_8 = arith.constant 0.000000e+00 : f32
    %50 = vector.broadcast %cst_8 : f32 to vector<16x512xf32>
    %51 = arith.select %48, %49, %50 : vector<16x512xi1>, vector<16x512xf32>
    %52 = arith.addf %46, %29 : vector<16x512xf32>
    %53 = arith.addf %52, %51 : vector<16x512xf32>
    %c0_9 = arith.constant 0 : index
    %c0_10 = arith.constant 0 : index
    %c0_11 = arith.constant 0 : index
    %54 = vector.load %arg4[%c0_9, %c0_10, %c0_11] : memref<1x16x512xf32, #tpu.memory_space<vmem>>, vector<1x16x512xf32>
    %55 = vector.shape_cast %54 : vector<1x16x512xf32> to vector<16x512xf32>
    %56 = vector.shape_cast %53 : vector<16x512xf32> to vector<1x16x512xf32>
    tpu.vector_store %arg4[%c0_9, %c0_10, %c0_11], %56 {strides = array<i32>} : memref<1x16x512xf32, #tpu.memory_space<vmem>>, vector<1x16x512xf32>,
    return
  }
  func.func @transform_0(%arg0: i32) -> (i32, i32, i32) {
    %c0_i32 = arith.constant 0 : i32
    %c0_i32_0 = arith.constant 0 : i32
    %c0_i32_1 = arith.constant 0 : i32
    return %arg0, %c0_i32, %c0_i32_0 : i32, i32, i32
  }
  func.func @transform_1(%arg0: i32) -> (i32, i32) {
    %c0_i32 = arith.constant 0 : i32
    %c0_i32_0 = arith.constant 0 : i32
    %c0_i32_1 = arith.constant 0 : i32
    return %c0_i32, %c0_i32_0 : i32, i32
  }
  func.func @transform_2(%arg0: i32) -> (i32, i32) {
    %c0_i32 = arith.constant 0 : i32
    %c0_i32_0 = arith.constant 0 : i32
    %c0_i32_1 = arith.constant 0 : i32
    return %c0_i32, %c0_i32_0 : i32, i32
  }
  func.func @transform_3(%arg0: i32) -> (i32, i32, i32) {
    %c0_i32 = arith.constant 0 : i32
    %c0_i32_0 = arith.constant 0 : i32
    %c0_i32_1 = arith.constant 0 : i32
    return %arg0, %c0_i32, %c0_i32_0 : i32, i32, i32
  }
}

</mosaic_0001>

<bundles_post_ra>
// kernel: tpu_custom_call.1
= control target key start
LH: loop header
LB: loop body
LE: loop exit
PB: predicated region body
PF: predicated region fallthrough
CT: control target
= control target key end

     0   :  { %8 = vsyncpa [#allocation3], 0  ;;  %s1678_s0 = inlined_call_operand.hbm [shape: f32[2,16,512], index: 0, kind: input, shape index: {}]   ;;  %s1679_s1 = inlined_call_operand.hbm [shape: f32[9,512], index: 1, kind: input, shape index: {}]   ;;  %s1680_s2 = inlined_call_operand.hbm [shape: f32[1,512], index: 2, kind: input, shape index: {}]   ;;  %s1681_s3 = inlined_call_operand.hbm [shape: f32[2,16,512], index: 3, kind: output, shape index: {}]  }
   0x1   :  { %10 = vsyncpa [#allocation3 + $0x1], 0 }
   0x2   :  { %11 = vsyncpa [#allocation6], 0 }
   0x3   :  { %12 = vsyncpa [#allocation4], 0 }
   0x4   :  { %14 = vsyncpa [#allocation4 + $0x1], 0  ;;  %s1040_s12 = smov 0   ;;  %s1042_s13 = smov 0  }
   0x5   :  { %s1044_s14 = smov 0   ;;  %s1046_s15 = smov 0  }
   0x6 LB: > { %s1061_s16 = sadd.s32 4294967295, %s1009_s15   ;;  %s765_s17 = sadd.s32 4294967294, %s1009_s15   ;;  %s1009_s15 = sphi %s1046_s15, %s1720_s15   ;;  %s1005_s14 = sphi %s1044_s14, %s1719_s14   ;;  %s1001_s13 = sphi %s1042_s13, %s1718_s13   ;;  %s997_s12 = sphi %s1040_s12, %s1717_s12  }
   0x7   : > { %p40_p0 = scmp.ne.s32.totalorder %s1001_s13, %s997_s12  ;;  %p1682_p1 = scmp.eq.s32.totalorder %s1061_s16, 0 }
   0x8   : > { %p106_p2 = scmp.eq.s32.totalorder %s1061_s16, 1  ;;  %p112_p3 = scmp.eq.s32.totalorder %s765_s17, 1 }
   0x9   : > { %p1070_p4 = por %p1682_p1, %p40_p0  ;;  %p766_p5 = scmp.ge.s32.totalorder %s1009_s15, 1 }
   0xa   : > { %p1075_p6 = por %p112_p3, %p40_p0  ;;  %p119_p7 = scmp.lt.s32.totalorder %s1009_s15, 3 }
   0xb   : > { %s1690_s18 = scalar_select %p1070_p4, 1, 0 }
   0xc   : > { %s1691_s19 = scalar_select %p1075_p6, 1, 0 }
   0xd   : > { %p1080_p8 = pnand %p766_p5, %p119_p7  ;;  %s1011_s21 = smov [#allocation5]  }
   0xe   : > { %s131_s22 = sshll.u32 %s1011_s21, 4  ;;  %s1012_s24 = smov [#allocation7]   ;;  %s132_s22 = int_to_ptr.vmem [resolvable:$true] %s131_s22 }
   0xf   : > { %s1692_s20 = scalar_select %p1080_p8, 1, 0 }
  0x10   : > { %p801_p9 = pneg %p1080_p8  ;;  %s145_s25 = sshll.u32 %s1012_s24, 4  ;;  %s146_s25 = int_to_ptr.vmem [resolvable:$true] %s145_s25 }
  0x11   : > { %s872_s26 = scalar_lea.vmem %s132_s22, 1024  ;;  %p880_p5 = scmp.lt.s32.totalorder %s132_s22, %s132_s22 }
  0x12   : > { %p1089_p11 = pnand %p801_p9, %p1682_p1  ;;  %p873_p13 = scmp.ne.s32.totalorder %s132_s22, %s872_s26 }
  0x13   : > { %p881_p7 = scmp.lt.s32.totalorder %s872_s26, %s872_s26 }
  0x14   : > { %p863_p12 = pneg %p1089_p11 }
  0x15   : > { %p882_p10 = por %p881_p7, %p880_p5 }
  0x16   : > { %p875_p0 = pnand %p873_p13, %p863_p12 }
  0x18   : > { %p876_p3 = pneg %p875_p0 }
  0x1a   : > { %p883_p9 = pnand %p882_p10, %p876_p3 }
  0x1c   : > { %886 = shalt.err (!%p883_p9)
}
  0x1d   : > { %s1013_s27 = smov 512   ;;  %s1014_s28 = smov 32  }
  0x1e   : > { %804 = dma.hbm_to_vmem [thread:$0]  (!%p1089_p11), %s1679_s1, 1024, %s132_s22, [#allocation6], %s1013_s27, %s1013_s27, %s1014_s28  }
  0x1f   : > { %s898_s4 = scalar_lea.vmem %s146_s25, 64  ;;  %p906_p10 = scmp.lt.s32.totalorder %s146_s25, %s146_s25 }
  0x20   : > { %p899_p13 = scmp.ne.s32.totalorder %s146_s25, %s898_s4  ;;  %p907_p3 = scmp.lt.s32.totalorder %s898_s4, %s898_s4 }
  0x22   : > { %p901_p0 = pnand %p899_p13, %p863_p12  ;;  %p908_p7 = por %p907_p3, %p906_p10 }
  0x24   : > { %p902_p5 = pneg %p901_p0 }
  0x26   : > { %p909_p9 = pnand %p908_p7, %p902_p5 }
  0x28   : > { %912 = shalt.err (!%p909_p9)
}
  0x29   : > { %807 = dma.hbm_to_vmem [thread:$0]  (!%p1089_p11), %s1680_s2, 64, %s146_s25, [#allocation6]  }
  0x2a   : > { %s1115_s7 = sadd.s32 1, %s1009_s15   ;;  %s27_s8 = sadd.s32 1, %s1005_s14 }
  0x2b   : > { %s24_s9 = ssub.s32 %s1009_s15, %s1115_s7  ;;  %p34_p12 = scmp.ne.s32.totalorder %s1005_s14, %s1001_s13 }
  0x2c   : > { %p25_p13 = scmp.eq.s32.totalorder %s24_s9, 0  ;;  %p35_p0 = scmp.eq.s32.totalorder %s1009_s15, 0 }
  0x2d   : > { %p1125_p5 = por %p106_p2, %p34_p12  ;;  %p818_p10 = scmp.lt.s32.totalorder %s1009_s15, 2 }
  0x2e   : > { %s1131_s11 = scalar_select %p25_p13, %s1005_s14, %s27_s8  }
  0x2f   : > { %s1694_s10 = scalar_select %p1125_p5, 1, 0 }
  0x30   : > { %p36_p3 = por %p35_p0, %p34_p12  ;;  %s156_s17 = sand.u32 1, %s1005_s14  }
  0x31   : > { %s770_s21 = sshll.u32 %s156_s17, 6  ;;  %s787_s22 = sshll.u32 %s1009_s15, 10 }
  0x32   : > { %s1138_s25 = scalar_lea.hbm %s1678_s0, %s787_s22  ;;  %s160_s26 = scalar_lea.vmem [#allocation2], %s770_s21 }
  0x33   : > { %s167_s29 = sshll.u32 %s160_s26, 4  ;;  %p1142_p2 = pnand %p818_p10, %p36_p3  ;;  %s1140_s29 = int_to_ptr.vmem [resolvable:$true] %s167_s29 }
  0x34   : > { %s1146_s4 = scalar_lea.sflag [#allocation3], %s156_s17  ;;  %s913_s5 = scalar_lea.hbm %s1138_s25, 1024 }
  0x35   : > { %p914_p11 = scmp.ne.s32.totalorder %s1138_s25, %s913_s5  ;;  %p915_p7 = pneg %p1142_p2 }
  0x36   : > { %s918_s9 = scalar_lea.hbm %s1678_s0, 2048  ;;  %p919_p13 = scmp.lt.s32.totalorder %s1138_s25, %s1678_s0 }
  0x37   : > { %p916_p9 = pnand %p915_p7, %p914_p11  ;;  %p920_p0 = scmp.lt.s32.totalorder %s918_s9, %s913_s5 }
  0x39   : > { %p917_p12 = pneg %p916_p9  ;;  %p921_p10 = por %p920_p0, %p919_p13 }
  0x3b   : > { %p922_p3 = pnand %p921_p10, %p917_p12 }
  0x3d   : > { %925 = shalt.err (!%p922_p3)
}
  0x3e   : > { %s926_s17 = scalar_lea.vmem %s1140_s29, 1024  ;;  %s1015_s23 = smov [#allocation2]  }
  0x3f   : > { %p927_p1 = scmp.ne.s32.totalorder %s1140_s29, %s926_s17  ;;  %s931_s24 = sshll.u32 %s1015_s23, 4  ;;  %s932_s24 = int_to_ptr.vmem [resolvable:$false] %s931_s24 }
  0x40   : > { %s933_s26 = scalar_lea.vmem %s932_s24, 2048  ;;  %p934_p9 = scmp.lt.s32.totalorder %s1140_s29, %s932_s24 }
  0x41   : > { %p929_p6 = pnand %p927_p1, %p915_p7  ;;  %p935_p5 = scmp.lt.s32.totalorder %s933_s26, %s926_s17 }
  0x43   : > { %p930_p11 = pneg %p929_p6  ;;  %p936_p4 = por %p935_p5, %p934_p9 }
  0x45   : > { %p937_p8 = pnand %p936_p4, %p930_p11 }
  0x47   : > { %940 = shalt.err (!%p937_p8)
}
  0x48   : > { %811 = dma.hbm_to_vmem [thread:$0]  (!%p1142_p2), %s1138_s25, 1024, %s1140_s29, %s1146_s4, %s1013_s27, %s1013_s27, %s1014_s28  }
  0x49   : > { %p1696_p1 = scmp.ne.s32.totalorder %s1692_s20, 0 }
  0x4b   : > { %179 = sbr.rel (%p1696_p1) target bundleno = 271 (0x10f), region = 32 }
  0x50   : > { %s1173_s5 = sand.u32 1, %s1001_s13   ;;  %p1697_p4 = scmp.ne.s32.totalorder %s1690_s18, 0 }
  0x51   : > { %s774_s6 = sshll.u32 %s1173_s5, 6  ;;  %s182_s8 = scalar_lea.sflag [#allocation3], %s1173_s5 }
  0x52   : > { %s185_s30 = scalar_lea.vmem [#allocation2], %s774_s6 }
  0x53   : > { %984 = dma.done.wait (%p1697_p4), %s182_s8, 1024  }
  0x54   : > { %986 = vsyncadd (%p1697_p4), %s182_s8, 4294966272  ;;  %p1698_p6 = scmp.eq.s32.totalorder %s1061_s16, 0 }
  0x56   : > { %988 = dma.done.wait (%p1698_p6), [#allocation6], 1088   ;;  %p1699_p8 = pmov %p1698_p6 }
  0x57   : > { %v217_v0 = vld [vmem:[%s185_s30 + $0x8] sm:$0xff]  ;;  %v1187_v1 = vld [vmem:[%s185_s30] sm:$0xff]  ;;  %s1016_s20 = smov 32   ;;  %v222_v4 = vld [vmem:[%s185_s30 + $0x30] sm:$0xff]  ;;  %s1017_s18 = smov 96   ;;  %v249_v8 = vlaneseq }
  0x58   : > { %990 = vsyncadd (%p1699_p8), [#allocation6], 4294966208  ;;  %237 = vrot.lane.b32.xlu1 %v217_v0, %s1016_s20  ;;  %233 = vrot.lane.b32.xlu0 %v1187_v1, %s1016_s20  ;;  %v221_v2 = vld [vmem:[%s185_s30 + $0x28] sm:$0xff]  ;;  %v1192_v3 = vld [vmem:[%s185_s30 + $0x20] sm:$0xff]  ;;  %s1541_s27 = scalar_lea.vmem [#allocation8], %s774_s6  ;;  %s788_s28 = sshll.u32 %s1061_s16, 10 }
  0x59   : > { %v218_v5 = vld [vmem:[%s185_s30 + $0x10] sm:$0xff]  ;;  %v1199_v6 = vld [vmem:[%s185_s30 + $0x38] sm:$0xff]  ;;  %v1211_v9 = vshrl.u32 %v249_v8, 7  ;;  %v1217_v12 = vld [vmem:[#allocation5 + $0x8] sm:$0xff]  ;;  %v1220_v14 = vand.u32 127, %v249_v8  ;;  %s673_s25 = sshll.u32 %s1541_s27, 4  ;;  %s1628_s4 = scalar_lea.hbm %s1681_s3, %s788_s28  ;;  %s1630_s25 = int_to_ptr.vmem [resolvable:$true] %s673_s25 }
  0x5a   : > { %v1201_v7 = vld [vmem:[%s185_s30 + $0x18] sm:$0xff]  ;;  %v1232_v20 = vld [vmem:[#allocation5 + $0x10] sm:$0xff]  ;;  %v224_v26 = vld [vmem:[#allocation5] sm:$0xff]  ;;  %s660_s9 = scalar_lea.sflag [#allocation4], %s1173_s5  ;;  %s941_s21 = scalar_lea.vmem %s1630_s25, 1024 }
  0x5b   : > { %v1214_v10 = vsub.s32 1, %v1211_v9  ;;  %v399_v11 = vsub.s32 4, %v1211_v9  ;;  %v516_v13 = vsub.s32 7, %v1211_v9  ;;  %v1223_v15 = vsub.s32 0, %v1211_v9  ;;  %v1256_v31 = vld [vmem:[#allocation5 + $0x18] sm:$0xff]  ;;  %p942_p5 = scmp.ne.s32.totalorder %s1630_s25, %s941_s21  ;;  %p1714_p2 = scmp.ne.s32.totalorder %s1694_s10, 0 }
  0x5c   : > { %239 = vrot.lane.b32.xlu1 %v221_v2, %s1016_s20  ;;  %235 = vrot.lane.b32.xlu0 %v1192_v3, %s1016_s20  ;;  %v1226_v16 = vsub.s32 3, %v1211_v9  ;;  %v492_v17 = vsub.s32 6, %v1211_v9  ;;  %vm251_vm0 = vcmp.lt.s32.totalorder %v1220_v14, 32  ;;  %v343_v61 = vsub.s32 2, %v1211_v9  ;;  %s1018_s22 = smov [#allocation8]  }
  0x5d   : > { %v316_v18 = vrot.slane %v1217_v12, %v1214_v10  ;;  %v404_v19 = vrot.slane %v1217_v12, %v399_v11  ;;  %v521_v21 = vrot.slane %v1217_v12, %v516_v13  ;;  %v1238_v22 = vrot.slane %v1217_v12, %v1223_v15  ;;  %p943_p7 = pnand %p942_p5, %p1714_p2  ;;  %s945_s17 = sshll.u32 %s1018_s22, 4  ;;  %s946_s17 = int_to_ptr.vmem [resolvable:$false] %s945_s17 }
  0x5e   : > { %v1242_v23 = vrot.slane %v1217_v12, %v1226_v16  ;;  %v1245_v24 = vrot.slane %v1217_v12, %v492_v17  ;;  %v320_v25 = vrot.slane %v1232_v20, %v1214_v10  ;;  %v408_v30 = vrot.slane %v1232_v20, %v399_v11  ;;  %s947_s23 = scalar_lea.vmem %s946_s17, 2048  ;;  %p948_p13 = scmp.lt.s32.totalorder %s1630_s25, %s946_s17 }
  0x5f   : > { %v1249_v27 = vmul.f32 %v316_v18, %v217_v0  ;;  %v1251_v28 = vmul.f32 %v404_v19, %v217_v0  ;;  %v1253_v29 = vmul.f32 %v316_v18, %v221_v2  ;;  %v1258_v32 = vmul.f32 %v521_v21, %v217_v0  ;;  %p944_p12 = pneg %p943_p7  ;;  %p949_p0 = scmp.lt.s32.totalorder %s947_s23, %s941_s21 }
  0x60   : > { %243 = vrot.lane.b32.xlu1 %v222_v4, %s1016_s20  ;;  %241 = vrot.lane.b32.xlu0 %v218_v5, %s1016_s20  ;;  %v1260_v33 = vmul.f32 %v404_v19, %v221_v2  ;;  %v1262_v34 = vmul.f32 %v521_v21, %v221_v2  ;;  %v525_v35 = vrot.slane %v1232_v20, %v516_v13  ;;  %vm276_vm1 = vcmp.lt.s32.totalorder %v1220_v14, 96 }
  0x61   : > { %v1267_v36 = vrot.slane %v1232_v20, %v1223_v15  ;;  %v1271_v37 = vrot.slane %v1232_v20, %v1226_v16  ;;  %v1274_v38 = vrot.slane %v1232_v20, %v492_v17  ;;  %v312_v39 = vrot.slane %v224_v26, %v1214_v10  ;;  %p950_p10 = por %p949_p0, %p948_p13 }
  0x62   : > { %v1277_v40 = vmul.f32 %v320_v25, %v222_v4  ;;  %v1280_v41 = vrot.slane %v224_v26, %v1223_v15  ;;  %v1284_v42 = vrot.slane %v1256_v31, %v1223_v15  ;;  %v324_v43 = vrot.slane %v1256_v31, %v1214_v10 }
  0x63   : > { %v1288_v44 = vmul.f32 %v408_v30, %v222_v4  ;;  %v1290_v45 = vmul.f32 %v320_v25, %v218_v5  ;;  %v400_v46 = vrot.slane %v224_v26, %v399_v11  ;;  %v412_v47 = vrot.slane %v1256_v31, %v399_v11  ;;  %p951_p3 = pnand %p950_p10, %p944_p12 }
  0x64   : > { %247 = vrot.lane.b32.xlu1 %v1199_v6, %s1016_s20  ;;  %245 = vrot.lane.b32.xlu0 %v1201_v7, %s1016_s20  ;;  %v1295_v50 = vmul.f32 %v525_v35, %v222_v4  ;;  %v1297_v51 = vmul.f32 %v408_v30, %v218_v5  ;;  %v1299_v52 = vmul.f32 %v525_v35, %v218_v5  ;;  %vm591_vm2 = vcmp.lt.s32.totalorder %v1211_v9, 1 }
  0x65   : > { %v517_v53 = vrot.slane %v224_v26, %v516_v13  ;;  %v1302_v54 = vmul.f32 %v312_v39, %v1192_v3  ;;  %v1305_v55 = vrot.slane %v224_v26, %v1226_v16  ;;  %v1309_v56 = vrot.slane %v1256_v31, %v1226_v16 }
  0x66   : > { %v529_v57 = vrot.slane %v1256_v31, %v516_v13  ;;  %v1313_v58 = vmul.f32 %v324_v43, %v1199_v6  ;;  %v1315_v59 = vrot.slane %v224_v26, %v492_v17  ;;  %v1318_v60 = vrot.slane %v1256_v31, %v492_v17 }
  0x67   : > { %v1322_v62 = vmul.f32 %v400_v46, %v1192_v3  ;;  %v1325_v63 = vmul.f32 %v412_v47, %v1199_v6  ;;  %v1335_v13 = vmul.f32 %v517_v53, %v1192_v3  ;;  %v1338_v17 = vmul.f32 %v412_v47, %v1201_v7 }
  0x68   : > { %262 = vrot.lane.b32.xlu1 %v1192_v3, %s1017_s18  ;;  %260 = vrot.lane.b32.xlu0 %v1187_v1, %s1017_s18  ;;  %v1341_v18 = vmul.f32 %v312_v39, %v1187_v1  ;;  %v1346_v21 = vmul.f32 %v529_v57, %v1199_v6  ;;  %v1349_v25 = vmul.f32 %v529_v57, %v1201_v7  ;;  %vm581_vm3 = vcmp.ge.s32.totalorder %v1211_v9, 1 }
  0x69   : > { %1701 = vst [vmem:[#allocation13_spill] sm:$0xff] %v1338_v17  ;;  %v1352_v30 = vmul.f32 %v400_v46, %v1187_v1  ;;  %v1355_v3 = vmul.f32 %v517_v53, %v1187_v1  ;;  %v1357_v35 = vrot.slane %v224_v26, %v343_v61  ;;  %v1370_v46 = vrot.slane %v1217_v12, %v343_v61 }
  0x6a   : > { %1702 = vst [vmem:[#allocation14_spill] sm:$0xff] %v1349_v25  ;;  %vm618_vm4 = vcmp.lt.s32.totalorder %v1211_v9, 7 }
  0x6c   : > { %266 = vrot.lane.b32.xlu1 %v221_v2, %s1017_s18  ;;  %264 = vrot.lane.b32.xlu0 %v217_v0, %s1017_s18  ;;  %v1328_v0 = vmul.f32 %v324_v43, %v1201_v7  ;;  %v232_v2 = vld [vmem:[#allocation7] sm:$0xf]  ;;  %v1363_v43 = vadd.s32 8, %v1211_v9 }
  0x6d   : > { %v1360_v39 = vrot.slane %v232_v2, %v1223_v15 }
  0x6e   : > { %1700 = vst [vmem:[#allocation12_spill] sm:$0xff] %v1328_v0  ;;  %vm609_vm5 = vcmp.lt.s32.totalorder %v1363_v43, 15 }
  0x6f   : > { %1703 = vst [vmem:[#allocation15_spill] sm:$0xff] %v1360_v39  ;;  %v1384_v39 = vrot.slane %v1232_v20, %v343_v61 }
  0x70   : > { %270 = vrot.lane.b32.xlu1 %v222_v4, %s1017_s18  ;;  %268 = vrot.lane.b32.xlu0 %v218_v5, %s1017_s18  ;;  %v431_v4 = vsub.s32 5, %v1211_v9 }
  0x71   : > { %1704 = vst [vmem:[#allocation16_spill] sm:$0xff] %v1384_v39 }
  0x72   : > { %v1376_v17 = vrot.slane %v1217_v12, %v431_v4  ;;  %v1394_v12 = vrot.slane %v1256_v31, %v431_v4 }
  0x74   : > { %274 = vrot.lane.b32.xlu1 %v1199_v6, %s1017_s18  ;;  %272 = vrot.lane.b32.xlu0 %v1201_v7, %s1017_s18  ;;  %v1367_v7 = vrot.slane %v224_v26, %v431_v4  ;;  %v1381_v26 = vrot.slane %v232_v2, %v1214_v10 }
  0xca   : > { %v238_v48 = vpop.permute.xlu1 %237  ;;  %v1293_v49 = vpop.permute.xlu0 %233 }
  0xcb   : > { %v256_v5 = vsel %vm251_vm0, %v1293_v49, %v238_v48 }
  0xcc   : > { %v302_v6 = vmul.f32 %v1238_v22, %v256_v5  ;;  %v390_v47 = vmul.f32 %v1242_v23, %v256_v5  ;;  %v507_v1 = vmul.f32 %v1245_v24, %v256_v5  ;;  %v1387_v5 = vrot.slane %v1256_v31, %v343_v61 }
  0xce   : > { %v240_v8 = vpop.permute.xlu1 %239  ;;  %v236_v11 = vpop.permute.xlu0 %235  ;;  %1705 = vst [vmem:[#allocation17_spill] sm:$0xff] %v1387_v5  ;;  %v1402_v10 = vadd.f32 %v1249_v27, %v302_v6  ;;  %v1405_v39 = vadd.f32 %v1251_v28, %v390_v47 }
  0xcf   : > { %v257_v19 = vsel %vm251_vm0, %v236_v11, %v240_v8 }
  0xd0   : > { %v306_v53 = vmul.f32 %v1238_v22, %v257_v19  ;;  %v394_v57 = vmul.f32 %v1242_v23, %v257_v19  ;;  %v1391_v22 = vrot.slane %v1232_v20, %v431_v4  ;;  %v1396_v23 = vrot.slane %v232_v2, %v343_v61 }
  0xd1   : > { %v511_v5 = vmul.f32 %v1245_v24, %v257_v19 }
  0xd2   : > { %v244_v15 = vpop.permute.xlu1 %243  ;;  %v242_v25 = vpop.permute.xlu0 %241  ;;  %1706 = vst [vmem:[#allocation18_spill] sm:$0xff] %v1391_v22  ;;  %v1411_v22 = vadd.f32 %v1258_v32, %v507_v1  ;;  %v1414_v31 = vadd.f32 %v1253_v29, %v306_v53 }
  0xd3   : > { %v255_v0 = vsel %vm251_vm0, %v240_v8, %v244_v15  ;;  %v1399_v8 = vrot.slane %v232_v2, %v1226_v16  ;;  %v254_v20 = vsel %vm251_vm0, %v238_v48, %v242_v25  ;;  %v1417_v16 = vadd.f32 %v1260_v33, %v394_v57 }
  0xd4   : > { %v307_v27 = vmul.f32 %v1267_v36, %v255_v0  ;;  %v395_v28 = vmul.f32 %v1271_v37, %v255_v0  ;;  %v512_v24 = vmul.f32 %v1274_v38, %v255_v0  ;;  %v303_v29 = vmul.f32 %v1267_v36, %v254_v20 }
  0xd5   : > { %v391_v4 = vmul.f32 %v1271_v37, %v254_v20  ;;  %v508_v33 = vmul.f32 %v1274_v38, %v254_v20  ;;  %v1431_v6 = vadd.f32 %v1262_v34, %v511_v5 }
  0xd6   : > { %v248_v61 = vpop.permute.xlu1 %247  ;;  %v246_v2 = vpop.permute.xlu0 %245  ;;  %v1449_v57 = vadd.f32 %v1288_v44, %v395_v28  ;;  %v1461_v5 = vadd.f32 %v1290_v45, %v303_v29 }
  0xd7   : > { %v253_v48 = vsel %vm251_vm0, %v244_v15, %v248_v61  ;;  %v259_v32 = vsel %vm251_vm0, %v248_v61, %v236_v11  ;;  %v258_v1 = vsel %vm251_vm0, %v246_v2, %v1293_v49  ;;  %v1439_v11 = vadd.f32 %v1277_v40, %v307_v27 }
  0xd8   : > { %v305_v19 = vmul.f32 %v1280_v41, %v259_v32  ;;  %v308_v47 = vmul.f32 %v1284_v42, %v253_v48  ;;  %v393_v0 = vmul.f32 %v1305_v55, %v259_v32  ;;  %v396_v36 = vmul.f32 %v1309_v56, %v253_v48 }
  0xd9   : > { %v510_v37 = vmul.f32 %v1315_v59, %v259_v32  ;;  %v513_v38 = vmul.f32 %v1318_v60, %v253_v48  ;;  %v1452_v15 = vadd.f32 %v1295_v50, %v512_v24  ;;  %v1456_v40 = vsel %vm251_vm0, %v242_v25, %v246_v2 }
  0xda   : > { %v1444_v53 = vpop.permute.xlu1 %262  ;;  %v1446_v34 = vpop.permute.xlu0 %260  ;;  %v301_v49 = vmul.f32 %v1280_v41, %v258_v1  ;;  %v1464_v20 = vadd.f32 %v1297_v51, %v391_v4  ;;  %v1467_v44 = vadd.f32 %v1299_v52, %v508_v33  ;;  %v337_v50 = vadd.f32 %v1302_v54, %v305_v19  ;;  %v778_v51 = vld [vmem:[#allocation5 + $0x20] ss:$0 sm:$0xff] }
  0xdb   : > { %v1473_v25 = vadd.f32 %v1313_v58, %v308_v47  ;;  %v425_v41 = vadd.f32 %v1322_v62, %v393_v0  ;;  %v389_v45 = vmul.f32 %v1305_v55, %v258_v1  ;;  %v506_v27 = vmul.f32 %v1315_v59, %v258_v1 }
  0xdc   : > { %v1480_v52 = vadd.f32 %v1325_v63, %v396_v36  ;;  %v542_v54 = vadd.f32 %v1335_v13, %v510_v37  ;;  %v1484_v61 = vadd.f32 %v1346_v21, %v513_v38  ;;  %v1488_v58 = vmul.f32 %v1284_v42, %v1456_v40  ;;  %v779_v37 = vld [vmem:[#allocation5 + $0x28] ss:$0 sm:$0xff] }
  0xdd   : > { %v333_v55 = vadd.f32 %v1341_v18, %v301_v49  ;;  %v1493_v59 = vmul.f32 %v1309_v56, %v1456_v40  ;;  %v421_v18 = vadd.f32 %v1352_v30, %v389_v45  ;;  %v538_v56 = vadd.f32 %v1355_v3, %v506_v27  ;;  %v1707_v3 = vld [vmem:[#allocation15_spill] sm:$0xff] }
  0xde   : > { %v267_v62 = vpop.permute.xlu1 %266  ;;  %v265_v2 = vpop.permute.xlu0 %264 }
  0xdf   : > { %v282_v63 = vsel %vm276_vm1, %v1444_v53, %v267_v62  ;;  %v281_v13 = vsel %vm276_vm1, %v1446_v34, %v265_v2 }
  0xe0   : > { %v361_v21 = vmul.f32 %v1357_v35, %v282_v63  ;;  %v449_v42 = vmul.f32 %v1367_v7, %v282_v63  ;;  %v566_v28 = vmul.f32 %v778_v51, %v282_v63  ;;  %v357_v24 = vmul.f32 %v1357_v35, %v281_v13 }
  0xe1   : > { %v445_v48 = vmul.f32 %v1367_v7, %v281_v13  ;;  %v562_v32 = vmul.f32 %v778_v51, %v281_v13 }
  0xe2   : > { %v369_v29 = vadd.f32 %v361_v21, %v337_v50  ;;  %v457_v4 = vadd.f32 %v449_v42, %v425_v41  ;;  %v574_v33 = vadd.f32 %v566_v28, %v542_v54  ;;  %v365_v19 = vadd.f32 %v357_v24, %v333_v55  ;;  %v271_v47 = vpop.permute.xlu1 %270  ;;  %v1507_v0 = vpop.permute.xlu0 %268 }
  0xe3   : > { %v453_v1 = vadd.f32 %v445_v48, %v421_v18  ;;  %v570_v36 = vadd.f32 %v562_v32, %v538_v56  ;;  %v280_v35 = vsel %vm276_vm1, %v267_v62, %v271_v47  ;;  %v279_v30 = vsel %vm276_vm1, %v265_v2, %v1507_v0 }
  0xe4   : > { %v486_v7 = vadd.f32 %v1707_v3, %v457_v4  ;;  %v587_v38 = vrot.slane %v369_v29, 7  ;;  %v614_v49 = vrot.slane %v574_v33, 1  ;;  %v583_v50 = vrot.slane %v365_v19, 7 }
  0xe5   : > { %v482_v41 = vadd.f32 %v1707_v3, %v453_v1  ;;  %v610_v45 = vrot.slane %v570_v36, 1  ;;  %v362_v27 = vmul.f32 %v1370_v46, %v280_v35  ;;  %v450_v51 = vmul.f32 %v1376_v17, %v280_v35 }
  0xe6   : > { %v592_v54 = vsel %vm591_vm2, %v583_v50, %v587_v38  ;;  %v596_v62 = vsel %vm591_vm2, %v587_v38, %v583_v50  ;;  %v567_v55 = vmul.f32 %v779_v37, %v280_v35  ;;  %v358_v2 = vmul.f32 %v1370_v46, %v279_v30  ;;  %v275_v46 = vpop.permute.xlu1 %274  ;;  %v1709_v38 = vld [vmem:[#allocation17_spill] sm:$0xff] }
  0xe7   : > { %v600_v63 = vsel %vm581_vm3, %v596_v62, 0.0  ;;  %v619_v13 = vsel %vm618_vm4, %v610_v45, %v614_v49  ;;  %v623_v21 = vsel %vm618_vm4, %v614_v49, %v610_v45  ;;  %v639_v42 = vadd.f32 %v592_v54, %v486_v7  ;;  %v780_v7 = vld [vmem:[#allocation5 + $0x30] ss:$0 sm:$0xff] }
  0xe8   : > { %v631_v28 = vsel %vm609_vm5, %v623_v21, 0.0  ;;  %v635_v24 = vadd.f32 %v600_v63, %v482_v41  ;;  %v370_v18 = vadd.f32 %v362_v27, %v1414_v31  ;;  %v458_v56 = vadd.f32 %v450_v51, %v1417_v16  ;;  %v1711_v21 = vld [vmem:[#allocation12_spill] sm:$0xff] }
  0xe9   : > { %v647_v48 = vadd.f32 %v639_v42, %v631_v28  ;;  %v575_v32 = vadd.f32 %v567_v55, %v1431_v6  ;;  %v366_v29 = vadd.f32 %v358_v2, %v1402_v10  ;;  %v446_v4 = vmul.f32 %v1376_v17, %v279_v30 }
  0xea   : > { %v643_v33 = vadd.f32 %v635_v24, %v619_v13  ;;  %v487_v19 = vadd.f32 %v1381_v26, %v458_v56  ;;  %v588_v1 = vrot.slane %v370_v18, 7  ;;  %v563_v36 = vmul.f32 %v779_v37, %v279_v30  ;;  %v273_v13 = vpop.permute.xlu0 %272  ;;  %v1713_v18 = vld [vmem:[#allocation14_spill] sm:$0xff] }
  0xeb   : > { %v509_v35 = vmul.f32 %v1318_v60, %v1456_v40  ;;  %655 = vst [vmem:[%s1541_s27 + $0x20] sm:$0xff] %v647_v48  ;;  %v454_v31 = vadd.f32 %v446_v4, %v1405_v39  ;;  %v584_v16 = vrot.slane %v366_v29, 7  ;;  %v278_v17 = vsel %vm276_vm1, %v271_v47, %v275_v46  ;;  %v1708_v40 = vld [vmem:[#allocation16_spill] sm:$0xff]  ;;  %v781_v47 = vld [vmem:[#allocation5 + $0x38] ss:$0 sm:$0xff] }
  0xec   : > { %651 = vst [vmem:[%s1541_s27] sm:$0xff] %v643_v33  ;;  %v615_v10 = vrot.slane %v575_v32, 1  ;;  %v571_v6 = vadd.f32 %v563_v36, %v1411_v22  ;;  %v284_v60 = vsel %vm276_vm1, %v275_v46, %v1444_v53  ;;  %v363_v37 = vmul.f32 %v1708_v40, %v278_v17  ;;  %v1710_v53 = vld [vmem:[#allocation18_spill] sm:$0xff] }
  0xed   : > { %v483_v30 = vadd.f32 %v1381_v26, %v454_v31  ;;  %v593_v3 = vsel %vm591_vm2, %v584_v16, %v588_v1  ;;  %v597_v39 = vsel %vm591_vm2, %v588_v1, %v584_v16  ;;  %v364_v49 = vmul.f32 %v1709_v38, %v284_v60 }
  0xee   : > { %v601_v22 = vsel %vm581_vm3, %v597_v39, 0.0  ;;  %v611_v50 = vrot.slane %v571_v6, 1  ;;  %v640_v41 = vadd.f32 %v593_v3, %v487_v19  ;;  %v451_v45 = vmul.f32 %v1710_v53, %v278_v17 }
  0xef   : > { %v636_v27 = vadd.f32 %v601_v22, %v483_v30  ;;  %v371_v26 = vadd.f32 %v363_v37, %v1439_v11  ;;  %v372_v51 = vadd.f32 %v364_v49, %v1473_v25  ;;  %v452_v54 = vmul.f32 %v1394_v12, %v284_v60  ;;  %v1712_v11 = vld [vmem:[#allocation13_spill] sm:$0xff] }
  0xf0   : > { %v620_v62 = vsel %vm618_vm4, %v611_v50, %v615_v10  ;;  %v624_v55 = vsel %vm618_vm4, %v615_v10, %v611_v50  ;;  %v568_v2 = vmul.f32 %v780_v7, %v278_v17  ;;  %v569_v63 = vmul.f32 %v781_v47, %v284_v60 }
  0xf1   : > { %v336_v42 = vadd.f32 %v1711_v21, %v1488_v58  ;;  %v424_v28 = vadd.f32 %v1712_v11, %v1493_v59  ;;  %v632_v25 = vsel %vm609_vm5, %v624_v55, 0.0  ;;  %v644_v24 = vadd.f32 %v636_v27, %v620_v62 }
  0xf2   : > { %v541_v56 = vadd.f32 %v1713_v18, %v509_v35  ;;  %v648_v46 = vadd.f32 %v640_v41, %v632_v25  ;;  %v576_v48 = vadd.f32 %v568_v2, %v1452_v15  ;;  %v577_v32 = vadd.f32 %v569_v63, %v1484_v61 }
  0xf3   : > { %652 = vst [vmem:[%s1541_s27 + $0x8] sm:$0xff] %v644_v24  ;;  %v459_v29 = vadd.f32 %v451_v45, %v1449_v57  ;;  %v460_v4 = vadd.f32 %v452_v54, %v1480_v52  ;;  %v277_v58 = vsel %vm276_vm1, %v1507_v0, %v273_v13  ;;  %v283_v59 = vsel %vm276_vm1, %v273_v13, %v1446_v34 }
  0xf4   : > { %656 = vst [vmem:[%s1541_s27 + $0x28] sm:$0xff] %v648_v46  ;;  %v589_v33 = vrot.slane %v371_v26, 7  ;;  %v590_v19 = vrot.slane %v372_v51, 7  ;;  %v359_v15 = vmul.f32 %v1708_v40, %v277_v58  ;;  %v360_v61 = vmul.f32 %v1709_v38, %v283_v59 }
  0xf5   : > { %v447_v1 = vmul.f32 %v1710_v53, %v277_v58  ;;  %v448_v57 = vmul.f32 %v1394_v12, %v283_v59  ;;  %v564_v52 = vmul.f32 %v780_v7, %v277_v58  ;;  %v565_v36 = vmul.f32 %v781_v47, %v283_v59 }
  0xf6   : > { %v616_v35 = vrot.slane %v576_v48, 1  ;;  %v617_v31 = vrot.slane %v577_v32, 1  ;;  %v367_v0 = vadd.f32 %v359_v15, %v1461_v5  ;;  %v368_v16 = vadd.f32 %v360_v61, %v336_v42 }
  0xf7   : > { %v455_v14 = vadd.f32 %v447_v1, %v1464_v20  ;;  %v456_v34 = vadd.f32 %v448_v57, %v424_v28  ;;  %v572_v17 = vadd.f32 %v564_v52, %v1467_v44  ;;  %v573_v10 = vadd.f32 %v565_v36, %v541_v56 }
  0xf8   : > { %v488_v6 = vadd.f32 %v1396_v23, %v459_v29  ;;  %v489_v60 = vadd.f32 %v1399_v8, %v460_v4  ;;  %v585_v40 = vrot.slane %v367_v0, 7  ;;  %v586_v12 = vrot.slane %v368_v16, 7 }
  0xf9   : > { %v484_v37 = vadd.f32 %v1396_v23, %v455_v14  ;;  %v485_v30 = vadd.f32 %v1399_v8, %v456_v34  ;;  %v612_v5 = vrot.slane %v572_v17, 1  ;;  %v613_v3 = vrot.slane %v573_v10, 1 }
  0xfa   : > { %v594_v20 = vsel %vm591_vm2, %v585_v40, %v589_v33  ;;  %v595_v44 = vsel %vm591_vm2, %v586_v12, %v590_v19  ;;  %v598_v39 = vsel %vm591_vm2, %v589_v33, %v585_v40  ;;  %v599_v7 = vsel %vm591_vm2, %v590_v19, %v586_v12 }
  0xfb   : > { %v602_v23 = vsel %vm581_vm3, %v598_v39, 0.0  ;;  %v603_v8 = vsel %vm581_vm3, %v599_v7, 0.0  ;;  %v621_v47 = vsel %vm618_vm4, %v612_v5, %v616_v35  ;;  %v622_v38 = vsel %vm618_vm4, %v613_v3, %v617_v31 }
  0xfc   : > { %v625_v49 = vsel %vm618_vm4, %v616_v35, %v612_v5  ;;  %v626_v22 = vsel %vm618_vm4, %v617_v31, %v613_v3  ;;  %v637_v50 = vadd.f32 %v602_v23, %v484_v37  ;;  %v638_v41 = vadd.f32 %v603_v8, %v485_v30 }
  0xfd   : > { %v633_v53 = vsel %vm609_vm5, %v625_v49, 0.0  ;;  %v634_v45 = vsel %vm609_vm5, %v626_v22, 0.0  ;;  %v641_v27 = vadd.f32 %v594_v20, %v488_v6  ;;  %v642_v26 = vadd.f32 %v595_v44, %v489_v60 }
  0xfe   : > { %v645_v51 = vadd.f32 %v637_v50, %v621_v47  ;;  %v646_v54 = vadd.f32 %v638_v41, %v622_v38 }
  0xff   : > { %v649_v9 = vadd.f32 %v641_v27, %v633_v53  ;;  %v650_v62 = vadd.f32 %v642_v26, %v634_v45 }
 0x100   : > { %653 = vst [vmem:[%s1541_s27 + $0x10] sm:$0xff] %v645_v51  ;;  %654 = vst [vmem:[%s1541_s27 + $0x18] sm:$0xff] %v646_v54 }
 0x101   : > { %657 = vst [vmem:[%s1541_s27 + $0x30] sm:$0xff] %v649_v9  ;;  %658 = vst [vmem:[%s1541_s27 + $0x38] sm:$0xff] %v650_v62 }
 0x102   : > { %954 = shalt.err (!%p951_p3)
}
 0x103   : > { %s955_s24 = scalar_lea.hbm %s1628_s4, 1024  ;;  %s959_s8 = scalar_lea.hbm %s1681_s3, 2048 }
 0x104   : > { %p956_p11 = scmp.ne.s32.totalorder %s1628_s4, %s955_s24  ;;  %p960_p4 = scmp.lt.s32.totalorder %s1628_s4, %s1681_s3 }
 0x105   : > { %p961_p6 = scmp.lt.s32.totalorder %s959_s8, %s955_s24 }
 0x106   : > { %p957_p9 = pnand %p956_p11, %p1714_p2 }
 0x107   : > { %p962_p8 = por %p961_p6, %p960_p4 }
 0x108   : > { %p958_p1 = pneg %p957_p9 }
 0x10a   : > { %p963_p5 = pnand %p962_p8, %p958_p1 }
 0x10c   : > { %966 = shalt.err (!%p963_p5)
}
 0x10d   : > { %s1019_s27 = smov 512  }
 0x10e   : > { %799 = dma.vmem_to_hbm [thread:$0]  (%p1714_p2), %s1630_s25, 1024, %s1628_s4, %s660_s9, %s1019_s27, %s1019_s27, %s1016_s20  }
 0x10f PF: > { %s688_s28 = sand.u32 1, %s997_s12   ;;  %p1715_p7 = scmp.ne.s32.totalorder %s1691_s19, 0 }
 0x110   : > { %p1716_p12 = scmp.ge.s32.totalorder %s1009_s15, 2  ;;  %s689_s16 = scalar_lea.sflag [#allocation4], %s688_s28 }
 0x112   : > { %p813_p13 = pnand %p1716_p12, %p1715_p7 }
 0x114   : > { %p814_p0 = pneg %p813_p13 }
 0x116   : > { %992 = dma.done.wait (%p814_p0), %s689_s16, 1024  }
 0x117   : > { %994 = vsyncadd (%p814_p0), %s689_s16, 4294966272  ;;  %p17_p10 = scmp.ge.s32.totalorder %s1115_s7, 4   ;;  %s1717_s12 = smov %s1001_s13 }
 0x118   : > { %s1718_s13 = smov %s1005_s14  ;;  %s1719_s14 = smov %s1131_s11 }
 0x119   : > { %s1720_s15 = smov %s1115_s7  ;;  %19 = sbr.rel (!%p17_p10) target bundleno = 6 (0x6), region = 85 }
 0x11e   :  { %694 = vsyncpa [#allocation3], 1 }
 0x11f   :  { %696 = vsyncpa [#allocation3 + $0x1], 1 }
 0x120   :  { %697 = vsyncpa [#allocation6], 1 }
 0x121   :  { %698 = vsyncpa [#allocation4], 1 }
 0x122   :  { %700 = vsyncpa [#allocation4 + $0x1], 1 }

</bundles_post_ra>
